<compile_context>
chip_gen: v7x
topology: tpu7x:2x2x1
jax: 0.10.0
libtpu: 0.0.40
codegen_flags: <defaults>
</compile_context>

<pallas_src>
import functools

import jax
import jax.numpy as jnp
from jax import lax
from jax.experimental import pallas as pl
from jax.experimental.pallas import tpu as pltpu

EPS = 1e-5
LANE = 128
SUBLANE = 8
VMEM_LIMIT = 32 * 1024 * 1024


# ---------------------------------------------------------------------------
# small helpers
# ---------------------------------------------------------------------------
def _ru(x, m):
    return (x + m - 1) // m * m


def _pad2d(a, rows, cols):
    r, c = a.shape
    if r == rows and c == cols:
        return a
    return jnp.pad(a, ((0, rows - r), (0, cols - c)))


def _pad1d(a, n, val):
    if a.shape[0] == n:
        return a
    return jnp.pad(a, (0, n - a.shape[0]), constant_values=val)


def _choose_tile_m(kp, cp, m):
    """Pick an M tile that keeps the pipelined VMEM footprint ~20 MiB."""
    budget = 20 * 1024 * 1024
    resident = 2 * kp * cp * 2 + 4 * 8 * cp * 4        # weights (bf16) + stats
    per_row = max(4 * kp + 8 * cp, 24 * cp)            # double-buffered tiles
    t = (budget - resident) // per_row
    t = max(SUBLANE, min(int(t), 1024))
    t = (t // SUBLANE) * SUBLANE
    t = min(t, _ru(m, SUBLANE))
    return max(t, SUBLANE)


def _row_spec(tile_m, cols):
    return pl.BlockSpec((tile_m, cols), lambda i: (i, 0))


def _resident_spec(shape):
    return pl.BlockSpec(shape, lambda i: (0, 0))


# ---------------------------------------------------------------------------
# Pallas kernels
# ---------------------------------------------------------------------------
def _mm_stats_kernel(p_ref, w_ref, y_ref, stats_ref):
    """y_tile = p_tile @ w (bf16 in, f32 acc); accumulate col sum / sumsq."""
    acc = jnp.dot(p_ref[...], w_ref[...], preferred_element_type=jnp.float32)
    y_ref[...] = acc

    @pl.when(pl.program_id(0) == 0)
    def _():
        stats_ref[...] = jnp.zeros_like(stats_ref)

    s = jnp.sum(acc, axis=0, keepdims=True)           # (1, Cp)
    ss = jnp.sum(acc * acc, axis=0, keepdims=True)    # (1, Cp)
    row = lax.broadcasted_iota(jnp.int32, stats_ref.shape, 0)
    stats_ref[...] += jnp.where(row == 0, s, jnp.where(row == 1, ss, 0.0))


def _affine_kernel(y_ref, sc_ref, sh_ref, o_ref, *, relu):
    """out = y * scale + shift (per-column), optional ReLU."""
    out = y_ref[...] * sc_ref[...] + sh_ref[...]
    if relu:
        out = jnp.maximum(out, 0.0)
    o_ref[...] = out.astype(o_ref.dtype)


def _combine_kernel(y_ref, id_ref, sc2_ref, sh2_ref, sci_ref, shi_ref, o_ref):
    """out = ReLU(BN2(y) + BN_ds(identity)) with BN folded into scale/shift."""
    out = (y_ref[...] * sc2_ref[...] + sh2_ref[...]
           + id_ref[...] * sci_ref[...] + shi_ref[...])
    o_ref[...] = jnp.maximum(out, 0.0).astype(o_ref.dtype)


# ---------------------------------------------------------------------------
# pallas_call wrappers
# ---------------------------------------------------------------------------
def matmul_with_stats(p_pad, w_pad, tile_m):
    """p_pad (Mp,Kp) bf16 @ w_pad (Kp,Cp) bf16 -> y (Mp,Cp) f32, stats (8,Cp)."""
    mp, kp = p_pad.shape
    cp = w_pad.shape[1]
    return pl.pallas_call(
        _mm_stats_kernel,
        out_shape=(jax.ShapeDtypeStruct((mp, cp), jnp.float32),
                   jax.ShapeDtypeStruct((8, cp), jnp.float32)),
        grid=(mp // tile_m,),
        in_specs=[_row_spec(tile_m, kp), _resident_spec((kp, cp))],
        out_specs=(_row_spec(tile_m, cp), _resident_spec((8, cp))),
        compiler_params=pltpu.CompilerParams(
            dimension_semantics=("arbitrary",),   # stats accumulate across tiles
            vmem_limit_bytes=VMEM_LIMIT),
    )(p_pad, w_pad)


def affine_act(y, scale, shift, tile_m, *, relu, out_dtype):
    mp, cp = y.shape
    kern = functools.partial(_affine_kernel, relu=relu)
    return pl.pallas_call(
        kern,
        out_shape=jax.ShapeDtypeStruct((mp, cp), out_dtype),
        grid=(mp // tile_m,),
        in_specs=[_row_spec(tile_m, cp), _resident_spec((1, cp)),
                  _resident_spec((1, cp))],
        out_specs=_row_spec(tile_m, cp),
        compiler_params=pltpu.CompilerParams(
            dimension_semantics=("parallel",), vmem_limit_bytes=VMEM_LIMIT),
    )(y, scale, shift)


def combine_residual(y2, identity, sc2, sh2, sci, shi, tile_m):
    mp, cp = y2.shape
    return pl.pallas_call(
        _combine_kernel,
        out_shape=jax.ShapeDtypeStruct((mp, cp), jnp.float32),
        grid=(mp // tile_m,),
        in_specs=[_row_spec(tile_m, cp), _row_spec(tile_m, cp),
                  _resident_spec((1, cp)), _resident_spec((1, cp)),
                  _resident_spec((1, cp)), _resident_spec((1, cp))],
        out_specs=_row_spec(tile_m, cp),
        compiler_params=pltpu.CompilerParams(
            dimension_semantics=("parallel",), vmem_limit_bytes=VMEM_LIMIT),
    )(y2, identity, sc2, sh2, sci, shi)


def _bn_scale_shift(stats, gamma, beta, m_true, cp):
    """Fold batch-stat BN into per-column scale/shift (var clamped >= 0)."""
    mean = stats[0, :] / m_true
    var = jnp.maximum(stats[1, :] / m_true - mean * mean, 0.0)
    g = _pad1d(gamma.astype(jnp.float32), cp, 1.0)
    b = _pad1d(beta.astype(jnp.float32), cp, 0.0)
    scale = g * lax.rsqrt(var + EPS)
    shift = b - mean * scale
    return scale.reshape(1, cp), shift.reshape(1, cp)


# ---------------------------------------------------------------------------
# Glue: im2col (plain JAX) + block wrapper
# ---------------------------------------------------------------------------
def im2col3x3(x_nhwc, stride):
    """3x3, pad=1 im2col.  Returns (N*Ho*Wo, 9*C), col order (kh, kw, c)."""
    N, H, W, C = x_nhwc.shape
    Ho = (H + 2 - 3) // stride + 1
    Wo = (W + 2 - 3) // stride + 1
    xp = jnp.pad(x_nhwc, ((0, 0), (1, 1), (1, 1), (0, 0)))
    cols = []
    for kh in range(3):
        for kw in range(3):
            cols.append(xp[:, kh:kh + (Ho - 1) * stride + 1:stride,
                              kw:kw + (Wo - 1) * stride + 1:stride, :])
    patches = jnp.stack(cols, axis=3)                 # (N, Ho, Wo, 9, C)
    return patches.reshape(N * Ho * Wo, 9 * C), (N, Ho, Wo)


def residual_block_forward(x_nchw, params, stride):
    x = jnp.transpose(x_nchw, (0, 2, 3, 1)).astype(jnp.float32)  # NHWC
    N, H, W, Cin = x.shape
    Cout = params["w1"].shape[1]
    has_ds = params.get("w_ds") is not None
    if not has_ds:
        assert stride == 1 and Cin == Cout, \
            "identity path requires stride == 1 and Cin == Cout"

    cp = _ru(Cout, LANE)
    k1p = _ru(9 * Cin, LANE)
    k2p = _ru(9 * Cout, LANE)
    kdp = _ru(Cin, LANE) if has_ds else 0

    # conv1 patches
    p1, (N_, Ho, Wo) = im2col3x3(x, stride)
    M = N_ * Ho * Wo

    tile_m = _choose_tile_m(max(k1p, k2p, kdp), cp, M)
    mp = _ru(M, tile_m)

    # ---- conv1 matmul + fused BN1 sum/sumsq reduction (tiled over M) ----
    p1p = _pad2d(p1, mp, k1p).astype(jnp.bfloat16)
    w1p = _pad2d(params["w1"].astype(jnp.float32), k1p, cp).astype(jnp.bfloat16)
    y1, st1 = matmul_with_stats(p1p, w1p, tile_m)
    sc1, sh1 = _bn_scale_shift(st1, params["g1"], params["b1"], M, cp)

    # ---- BN1 normalize + ReLU (tiled), stored bf16 for conv2 ----
    out1 = affine_act(y1, sc1, sh1, tile_m, relu=True, out_dtype=jnp.bfloat16)
    out1_img = out1[:M, :Cout].reshape(N_, Ho, Wo, Cout)

    # ---- conv2 matmul + fused BN2 stats ----
    # TODO(synk): fuse conv2's patch extraction into the kernel via shifted-window
    # index_maps (9 accumulated matmuls) to remove the 9x im2col HBM blow-up.
    p2, _ = im2col3x3(out1_img, 1)
    p2p = _pad2d(p2, mp, k2p)                         # already bf16
    w2p = _pad2d(params["w2"].astype(jnp.float32), k2p, cp).astype(jnp.bfloat16)
    y2, st2 = matmul_with_stats(p2p, w2p, tile_m)
    sc2, sh2 = _bn_scale_shift(st2, params["g2"], params["b2"], M, cp)

    # ---- identity branch ----
    if has_ds:
        xs = x[:, ::stride, ::stride, :].reshape(M, Cin)
        xsp = _pad2d(xs, mp, kdp).astype(jnp.bfloat16)
        wdp = _pad2d(params["w_ds"].astype(jnp.float32), kdp, cp).astype(jnp.bfloat16)
        yd, std_ = matmul_with_stats(xsp, wdp, tile_m)
        sci, shi = _bn_scale_shift(std_, params["g_ds"], params["b_ds"], M, cp)
        identity = yd                                  # raw conv_ds output, f32
    else:
        identity = _pad2d(x.reshape(M, Cin), mp, cp)
        sci = jnp.ones((1, cp), jnp.float32)
        shi = jnp.zeros((1, cp), jnp.float32)

    # ---- BN2 + BN_ds (fused) + residual add + ReLU (tiled) ----
    out = combine_residual(y2, identity, sc2, sh2, sci, shi, tile_m)
    y = out[:M, :Cout].reshape(N_, Ho, Wo, Cout)
    return jnp.transpose(y, (0, 3, 1, 2))             # back to NCHW


# ---------------------------------------------------------------------------
# Pure-JAX references (for sanity checks)
# ---------------------------------------------------------------------------
def _bn_ref(y, g, b):
    mean = jnp.mean(y, axis=(0, 1, 2), keepdims=True)
    var = jnp.mean((y - mean) ** 2, axis=(0, 1, 2), keepdims=True)
    return (y - mean) * g / jnp.sqrt(var + EPS) + b


def residual_block_ref(x_nchw, params, stride, *, mxu_bf16=False):
    x = jnp.transpose(x_nchw, (0, 2, 3, 1)).astype(jnp.float32)
    Cin = x.shape[-1]
    Cout = params["w1"].shape[1]

    def conv(inp, w_mat, k, s, cin, cout, pad):
        w = w_mat.reshape(k, k, cin, cout).astype(jnp.float32)
        if mxu_bf16:
            inp = inp.astype(jnp.bfloat16)
            w = w.astype(jnp.bfloat16)
        return lax.conv_general_dilated(
            inp, w, (s, s), [(pad, pad), (pad, pad)],
            dimension_numbers=("NHWC", "HWIO", "NHWC"),
            preferred_element_type=jnp.float32)

    out = conv(x, params["w1"], 3, stride, Cin, Cout, 1)
    out = jnp.maximum(_bn_ref(out, params["g1"], params["b1"]), 0.0)
    if mxu_bf16:  # kernel stores conv1's activation in bf16
        out = out.astype(jnp.bfloat16).astype(jnp.float32)
    out = conv(out, params["w2"], 3, 1, Cout, Cout, 1)
    out = _bn_ref(out, params["g2"], params["b2"])
    if params.get("w_ds") is not None:
        ident = conv(x, params["w_ds"], 1, stride, Cin, Cout, 0)
        ident = _bn_ref(ident, params["g_ds"], params["b_ds"])
    else:
        ident = x
    y = jnp.maximum(out + ident, 0.0)
    return jnp.transpose(y, (0, 3, 1, 2))


# ---------------------------------------------------------------------------
def make_params(key, in_channels, out_channels, stride):
    ks = jax.random.split(key, 9)
    # conv weights stored directly in im2col layout: (kh*kw*cin, cout),
    # equivalent to PyTorch (cout, cin, kh, kw).transpose(2, 3, 1, 0).reshape(...)
    p = {
        "w1": 0.1 * jax.random.normal(ks[0], (9 * in_channels, out_channels),
                                      jnp.float32),
        "g1": 1.0 + 0.1 * jax.random.normal(ks[1], (out_channels,), jnp.float32),
        "b1": 0.1 * jax.random.normal(ks[2], (out_channels,), jnp.float32),
        "w2": 0.1 * jax.random.normal(ks[3], (9 * out_channels, out_channels),
                                      jnp.float32),
        "g2": 1.0 + 0.1 * jax.random.normal(ks[4], (out_channels,), jnp.float32),
        "b2": 0.1 * jax.random.normal(ks[5], (out_channels,), jnp.float32),
    }
    if stride != 1 or in_channels != out_channels:
        p["w_ds"] = 0.1 * jax.random.normal(ks[6], (in_channels, out_channels),
                                            jnp.float32)
        p["g_ds"] = 1.0 + 0.1 * jax.random.normal(ks[7], (out_channels,),
                                                  jnp.float32)
        p["b_ds"] = 0.1 * jax.random.normal(ks[8], (out_channels,), jnp.float32)
    else:
        p["w_ds"] = None
    return p


def _check_case(key, N, Cin, Cout, H, W, stride):
    k_x, k_p = jax.random.split(key)
    x = jax.random.normal(k_x, (N, Cin, H, W), jnp.float32)   # NCHW like PyTorch
    params = make_params(k_p, Cin, Cout, stride)

    y = jax.block_until_ready(residual_block_forward(x, params, stride))
    Ho = (H + 2 - 3) // stride + 1
    Wo = (W + 2 - 3) // stride + 1
    assert y.shape == (N, Cout, Ho, Wo), y.shape

    # Tight check vs a reference that matches the kernel's precision choices
    # (bf16 MXU inputs, f32 accumulation, bf16 intermediate activation).
    y_bref = residual_block_ref(x, params, stride, mxu_bf16=True)
    err_b = float(jnp.max(jnp.abs(y - y_bref)))
    assert err_b < 5e-3, f"mismatch vs bf16-matched reference: {err_b}"

    # Loose check vs the pure-f32 reference (deviation == bf16 MXU rounding).
    y_fref = residual_block_ref(x, params, stride, mxu_bf16=False)
    err_f = float(jnp.max(jnp.abs(y - y_fref)))
    assert err_f < 1e-1, f"mismatch vs f32 reference: {err_f}"


if __name__ == "__main__":
    key = jax.random.PRNGKey(0)
    k0, k1 = jax.random.split(key)

    # downsample path: stride 2, channel expansion
    _check_case(k0, N=2, Cin=4, Cout=8, H=16, W=16, stride=2)
    # plain identity path: stride 1, Cin == Cout
    _check_case(k1, N=2, Cin=8, Cout=8, H=8, W=8, stride=1)

    print("KERNEL_OK")
</pallas_src>

<mosaic_0001>
module attributes {stable_mosaic.version = 11 : i64} {
  func.func @_mm_stats_kernel(%arg0: i32, %arg1: memref<128x128xbf16, #tpu.memory_space<vmem>>, %arg2: memref<128x128xbf16, #tpu.memory_space<vmem>>, %arg3: memref<128x128xf32, #tpu.memory_space<vmem>>, %arg4: memref<8x128xf32, #tpu.memory_space<vmem>>) attributes {dimension_semantics = [#tpu.dimension_semantics<arbitrary>], iteration_bounds = array<i64: 1>, scalar_prefetch = 0 : i64, scratch_operands = 0 : i64, tpu.core_type = #tpu.core_type<tc>, window_params = [{transform_indices = @transform_0, window_bounds = array<i64: 128, 128>}, {pipeline_mode = #tpu.pipeline_mode<synchronous>, transform_indices = @transform_1, window_bounds = array<i64: 128, 128>}, {transform_indices = @transform_2, window_bounds = array<i64: 128, 128>}, {pipeline_mode = #tpu.pipeline_mode<synchronous>, transform_indices = @transform_3, window_bounds = array<i64: 8, 128>}]} {
    %c0 = arith.constant 0 : index
    %c0_0 = arith.constant 0 : index
    %0 = vector.load %arg1[%c0, %c0_0] : memref<128x128xbf16, #tpu.memory_space<vmem>>, vector<128x128xbf16>
    %c0_1 = arith.constant 0 : index
    %c0_2 = arith.constant 0 : index
    %1 = vector.load %arg2[%c0_1, %c0_2] : memref<128x128xbf16, #tpu.memory_space<vmem>>, vector<128x128xbf16>
    %cst = arith.constant dense<0.000000e+00> : vector<128x128xf32>
    %2 = tpu.matmul %0, %1, %cst {dimension_numbers = #tpu.dot_dimension_numbers<[1], [0], [0], [1], [0, 0, 1, 1], [], []>} : vector<128x128xbf16>, vector<128x128xbf16>, vector<128x128xf32> -> vector<128x128xf32>
    %c0_3 = arith.constant 0 : index
    %c0_4 = arith.constant 0 : index
    %3 = vector.load %arg3[%c0_3, %c0_4] : memref<128x128xf32, #tpu.memory_space<vmem>>, vector<128x128xf32>
    tpu.vector_store %arg3[%c0_3, %c0_4], %2 {strides = array<i32>} : memref<128x128xf32, #tpu.memory_space<vmem>>, vector<128x128xf32>,
    %c0_i32 = arith.constant 0 : i32
    %4 = arith.cmpi eq, %arg0, %c0_i32 : i32
    %5 = arith.extui %4 : i1 to i32
    %c0_i32_5 = arith.constant 0 : i32
    %6 = arith.cmpi ne, %5, %c0_i32_5 : i32
    scf.if %6 {
      %cst_14 = arith.constant 0.000000e+00 : f32
      %27 = vector.broadcast %cst_14 : f32 to vector<8x128xf32>
      %c0_15 = arith.constant 0 : index
      %c0_16 = arith.constant 0 : index
      %28 = vector.load %arg4[%c0_15, %c0_16] : memref<8x128xf32, #tpu.memory_space<vmem>>, vector<8x128xf32>
      tpu.vector_store %arg4[%c0_15, %c0_16], %27 {strides = array<i32>} : memref<8x128xf32, #tpu.memory_space<vmem>>, vector<8x128xf32>,
    } else {
    }
    %cst_6 = arith.constant dense<0.000000e+00> : vector<128xf32>
    %7 = vector.multi_reduction <add>, %2, %cst_6 [0] : vector<128x128xf32> to vector<128xf32>
    %8 = vector.shape_cast %7 : vector<128xf32> to vector<1x128xf32>
    %9 = arith.mulf %2, %2 : vector<128x128xf32>
    %cst_7 = arith.constant dense<0.000000e+00> : vector<128xf32>
    %10 = vector.multi_reduction <add>, %9, %cst_7 [0] : vector<128x128xf32> to vector<128xf32>
    %11 = vector.shape_cast %10 : vector<128xf32> to vector<1x128xf32>
    %12 = tpu.iota {dimensions = array<i32: 0>} : vector<8x128xi32>
    %c0_8 = arith.constant 0 : index
    %c0_9 = arith.constant 0 : index
    %13 = vector.load %arg4[%c0_8, %c0_9] : memref<8x128xf32, #tpu.memory_space<vmem>>, vector<8x128xf32>
    %c0_i32_10 = arith.constant 0 : i32
    %14 = vector.broadcast %c0_i32_10 : i32 to vector<8x128xi32>
    %15 = arith.cmpi eq, %12, %14 : vector<8x128xi32>
    %c1_i32 = arith.constant 1 : i32
    %16 = vector.broadcast %c1_i32 : i32 to vector<8x128xi32>
    %17 = arith.cmpi eq, %12, %16 : vector<8x128xi32>
    %cst_11 = arith.constant 0.000000e+00 : f32
    %18 = vector.shape_cast %11 : vector<1x128xf32> to vector<1x128xf32>
    %19 = vector.broadcast %18 : vector<1x128xf32> to vector<8x128xf32>
    %20 = vector.broadcast %cst_11 : f32 to vector<8x128xf32>
    %21 = arith.select %17, %19, %20 : vector<8x128xi1>, vector<8x128xf32>
    %22 = vector.shape_cast %8 : vector<1x128xf32> to vector<1x128xf32>
    %23 = vector.broadcast %22 : vector<1x128xf32> to vector<8x128xf32>
    %24 = arith.select %15, %23, %21 : vector<8x128xi1>, vector<8x128xf32>
    %25 = arith.addf %13, %24 : vector<8x128xf32>
    %c0_12 = arith.constant 0 : index
    %c0_13 = arith.constant 0 : index
    %26 = vector.load %arg4[%c0_12, %c0_13] : memref<8x128xf32, #tpu.memory_space<vmem>>, vector<8x128xf32>
    tpu.vector_store %arg4[%c0_12, %c0_13], %25 {strides = array<i32>} : memref<8x128xf32, #tpu.memory_space<vmem>>, vector<8x128xf32>,
    return
  }
  func.func @transform_0(%arg0: i32) -> (i32, i32) {
    %c0_i32 = arith.constant 0 : i32
    %c0_i32_0 = arith.constant 0 : i32
    return %arg0, %c0_i32 : i32, i32
  }
  func.func @transform_1(%arg0: i32) -> (i32, i32) {
    %c0_i32 = arith.constant 0 : i32
    %c0_i32_0 = arith.constant 0 : i32
    %c0_i32_1 = arith.constant 0 : i32
    return %c0_i32, %c0_i32_0 : i32, i32
  }
  func.func @transform_2(%arg0: i32) -> (i32, i32) {
    %c0_i32 = arith.constant 0 : i32
    %c0_i32_0 = arith.constant 0 : i32
    return %arg0, %c0_i32 : i32, i32
  }
  func.func @transform_3(%arg0: i32) -> (i32, i32) {
    %c0_i32 = arith.constant 0 : i32
    %c0_i32_0 = arith.constant 0 : i32
    %c0_i32_1 = arith.constant 0 : i32
    return %c0_i32, %c0_i32_0 : i32, i32
  }
}

</mosaic_0001>

<bundles_post_ra>
// kernel: tpu_custom_call.1
= control target key start
LH: loop header
LB: loop body
LE: loop exit
PB: predicated region body
PF: predicated region fallthrough
CT: control target
= control target key end

     0   :  { %9 = vsyncpa [#allocation3], 0  ;;  %s684_s0 = inlined_call_operand.hbm [shape: bf16[128,128], index: 0, kind: input, shape index: {}]   ;;  %s685_s1 = inlined_call_operand.hbm [shape: bf16[128,128], index: 1, kind: input, shape index: {}]   ;;  %s686_s2 = inlined_call_operand.hbm [shape: f32[128,128], index: 2, kind: output, shape index: {0}]   ;;  %s687_s3 = inlined_call_operand.hbm [shape: f32[8,128], index: 3, kind: output, shape index: {1}]  }
   0x1   :  { %10 = vsyncpa [#allocation6], 0 }
   0x2   :  { %11 = vsyncpa [#allocation4], 0 }
   0x3   :  { %12 = vsyncpa [#allocation9], 0  ;;  %s590_s12 = smov [#allocation2]   ;;  %s494_s16 = scalar_lea.hbm %s684_s0, 1024 }
   0x4   :  { %s18_s13 = sshll.u32 %s590_s12, 4  ;;  %p495_p0 = scmp.ne.s32.totalorder %s684_s0, %s494_s16  ;;  %s19_s13 = int_to_ptr.vmem [resolvable:$true] %s18_s13 }
   0x5   :  { %p498_p1 = scmp.lt.u32.totalorder %s494_s16, %s684_s0 }
   0x7   :  { %p500_p2 = pnand %p498_p1, %p495_p0 }
   0x9   :  { %503 = shalt.err (!%p500_p2)
}
   0xa   :  { %s504_s21 = scalar_lea.vmem %s19_s13, 1024  ;;  %p509_p4 = scmp.lt.s32.totalorder %s19_s13, %s19_s13 }
   0xb   :  { %p505_p3 = scmp.ne.s32.totalorder %s19_s13, %s504_s21  ;;  %p510_p5 = scmp.lt.s32.totalorder %s504_s21, %s504_s21 }
   0xd   :  { %p511_p6 = por %p510_p5, %p509_p4 }
   0xf   :  { %p512_p7 = pnand %p511_p6, %p505_p3 }
  0x11   :  { %515 = shalt.err (!%p512_p7)
}
  0x12   :  { %s591_s22 = smov 64   ;;  %s592_s23 = smov 4  }
  0x13   :  { %24 = dma.hbm_to_vmem [thread:$0]  %s684_s0, 1024, %s19_s13, [#allocation3], %s591_s22, %s591_s22, %s592_s23  }
  0x14   :  { %s593_s26 = smov [#allocation5]   ;;  %s516_s30 = scalar_lea.hbm %s685_s1, 1024 }
  0x15   :  { %s30_s27 = sshll.u32 %s593_s26, 4  ;;  %p517_p8 = scmp.ne.s32.totalorder %s685_s1, %s516_s30  ;;  %s31_s27 = int_to_ptr.vmem [resolvable:$true] %s30_s27 }
  0x16   :  { %p520_p9 = scmp.lt.u32.totalorder %s516_s30, %s685_s1 }
  0x18   :  { %p522_p10 = pnand %p520_p9, %p517_p8 }
  0x1a   :  { %525 = shalt.err (!%p522_p10)
}
  0x1b   :  { %s526_s8 = scalar_lea.vmem %s31_s27, 1024  ;;  %p531_p12 = scmp.lt.s32.totalorder %s31_s27, %s31_s27 }
  0x1c   :  { %p527_p11 = scmp.ne.s32.totalorder %s31_s27, %s526_s8  ;;  %p532_p13 = scmp.lt.s32.totalorder %s526_s8, %s526_s8 }
  0x1e   :  { %p533_p0 = por %p532_p13, %p531_p12 }
  0x20   :  { %p534_p1 = pnand %p533_p0, %p527_p11 }
  0x22   :  { %537 = shalt.err (!%p534_p1)
}
  0x23   :  { %36 = dma.hbm_to_vmem [thread:$0]  %s685_s1, 1024, %s31_s27, [#allocation6], %s591_s22, %s591_s22, %s592_s23  }
  0x24   :  { %582 = dma.done.wait [#allocation3], 1024  }
  0x25   :  { %583 = vsyncadd [#allocation3], 4294966272 }
  0x26   :  { %584 = dma.done.wait [#allocation6], 1024  }
  0x27   :  { %585 = vsyncadd [#allocation6], 4294966272  ;;  %v478_v0 = vld [vmem:[#allocation5] sm:$0xff]   ;;  %v479_v1 = vld [vmem:[#allocation5 + $0x8] sm:$0xff]   ;;  %s594_s1 = smov [#allocation7]  }
  0x28   :  { %421 = vmatprep.subr.bf16.mxu0 %v478_v0  ;;  %453 = vmatprep.subr.bf16.mxu1 %v478_v0  ;;  %v480_v2 = vld [vmem:[#allocation5 + $0x10] sm:$0xff]   ;;  %v481_v3 = vld [vmem:[#allocation5 + $0x18] sm:$0xff]   ;;  %v486_v4 = vld [vmem:[#allocation2] sm:$0xff]   ;;  %s362_s10 = sshll.u32 %s594_s1, 4  ;;  %s363_s10 = int_to_ptr.vmem [resolvable:$true] %s362_s10 }
  0x29   :  { %422 = vmatpush3.bf16.msra.mxu0 %v478_v0  ;;  %461 = vmatpush3.bf16.msra.mxu1 %v478_v0  ;;  %v482_v5 = vld [vmem:[#allocation5 + $0x20] sm:$0xff]   ;;  %v483_v7 = vld [vmem:[#allocation5 + $0x28] sm:$0xff]   ;;  %v484_v8 = vld [vmem:[#allocation5 + $0x30] sm:$0xff]   ;;  %s538_s11 = scalar_lea.vmem %s363_s10, 2048  ;;  %p543_p3 = scmp.lt.s32.totalorder %s363_s10, %s363_s10 }
  0x2a   :  { %423 = vmatprep.subr.bf16.mxu0 %v479_v1  ;;  %454 = vmatprep.subr.bf16.mxu1 %v479_v1  ;;  %v490_v6 = vld [vmem:[#allocation2 + $0x20] sm:$0xff]   ;;  %v485_v9 = vld [vmem:[#allocation5 + $0x38] sm:$0xff]   ;;  %v487_v10 = vld [vmem:[#allocation2 + $0x8] sm:$0xff]   ;;  %p539_p2 = scmp.ne.s32.totalorder %s363_s10, %s538_s11  ;;  %p544_p4 = scmp.lt.s32.totalorder %s538_s11, %s538_s11 }
  0x2b   :  { %437 = vmatprep.mubr.bf16.mxu0 %v486_v4  ;;  %445 = vmatprep.mubr.bf16.mxu1 %v490_v6  ;;  %v491_v11 = vld [vmem:[#allocation2 + $0x28] sm:$0xff]   ;;  %v488_v12 = vld [vmem:[#allocation2 + $0x10] sm:$0xff]   ;;  %v489_v14 = vld [vmem:[#allocation2 + $0x18] sm:$0xff]  }
  0x2c   :  { %v492_v13 = vld [vmem:[#allocation2 + $0x30] sm:$0xff]   ;;  %v493_v15 = vld [vmem:[#allocation2 + $0x38] sm:$0xff]   ;;  %p545_p5 = por %p544_p4, %p543_p3 }
  0x2d   :  { %424 = vmatpush3.bf16.msra.mxu0 %v479_v1  ;;  %462 = vmatpush3.bf16.msra.mxu1 %v479_v1 }
  0x2e   :  { %425 = vmatprep.subr.bf16.mxu0 %v480_v2  ;;  %455 = vmatprep.subr.bf16.mxu1 %v480_v2  ;;  %p546_p6 = pnand %p545_p5, %p539_p2 }
  0x31   :  { %426 = vmatpush3.bf16.msra.mxu0 %v480_v2  ;;  %463 = vmatpush3.bf16.msra.mxu1 %v480_v2 }
  0x32   :  { %427 = vmatprep.subr.bf16.mxu0 %v481_v3  ;;  %456 = vmatprep.subr.bf16.mxu1 %v481_v3 }
  0x35   :  { %428 = vmatpush3.bf16.msra.mxu0 %v481_v3  ;;  %464 = vmatpush3.bf16.msra.mxu1 %v481_v3 }
  0x36   :  { %429 = vmatprep.subr.bf16.mxu0 %v482_v5  ;;  %457 = vmatprep.subr.bf16.mxu1 %v482_v5 }
  0x39   :  { %430 = vmatpush3.bf16.msra.mxu0 %v482_v5  ;;  %465 = vmatpush3.bf16.msra.mxu1 %v482_v5 }
  0x3a   :  { %431 = vmatprep.subr.bf16.mxu0 %v483_v7  ;;  %458 = vmatprep.subr.bf16.mxu1 %v483_v7 }
  0x3d   :  { %432 = vmatpush3.bf16.msra.mxu0 %v483_v7  ;;  %466 = vmatpush3.bf16.msra.mxu1 %v483_v7 }
  0x3e   :  { %433 = vmatprep.subr.bf16.mxu0 %v484_v8  ;;  %459 = vmatprep.subr.bf16.mxu1 %v484_v8 }
  0x41   :  { %434 = vmatpush3.bf16.msra.mxu0 %v484_v8  ;;  %467 = vmatpush3.bf16.msra.mxu1 %v484_v8 }
  0x42   :  { %435 = vmatprep.subr.bf16.mxu0 %v485_v9  ;;  %460 = vmatprep.subr.bf16.mxu1 %v485_v9 }
  0x45   :  { %436 = vmatpush3.bf16.msra.mxu0 %v485_v9  ;;  %468 = vmatpush3.bf16.msra.mxu1 %v485_v9 }
  0x48   :  { %438 = vmatmul.mubr.bf16.vlgmr.msra.gmra.mrb[0].mxu0 %v487_v10  ;;  %446 = vmatmul.mubr.bf16.vlgmr.msra.gmra.mrb[0].mxu1 %v491_v11 }
  0x49   :  { %441 = vmatprep.mubr.bf16.mxu0 %v488_v12  ;;  %449 = vmatprep.mubr.bf16.mxu1 %v492_v13 }
  0x50   :  { %442 = vmatmul.mubr.bf16.gmra.mrb[4].mxu0 %v489_v14  ;;  %450 = vmatmul.mubr.bf16.gmra.mrb[4].mxu1 %v493_v15 }
 0x11b   :  { %v439_v16 = vpop.f32.mrb[0].mxu0  ;;  %v642_v17 = vpop.f32.mrb[0].mxu1 }
 0x11c   :  { %271 = vst [vmem:[#allocation7 + $0x10] sm:$0xff] %v439_v16  ;;  %v206_v18 = vpop.f32.mrb[1].mxu0  ;;  %279 = vst [vmem:[#allocation7 + $0x50] sm:$0xff] %v642_v17  ;;  %v645_v19 = vpop.f32.mrb[1].mxu1  ;;  %v313_v27 = vmul.f32 %v439_v16, %v439_v16 }
 0x11d   :  { %269 = vst [vmem:[#allocation7] sm:$0xff] %v206_v18  ;;  %v440_v20 = vpop.f32.mrb[2].mxu0  ;;  %277 = vst [vmem:[#allocation7 + $0x40] sm:$0xff] %v645_v19  ;;  %v648_v21 = vpop.f32.mrb[2].mxu1  ;;  %v311_v24 = vmul.f32 %v206_v18, %v206_v18 }
 0x11e   :  { %272 = vst [vmem:[#allocation7 + $0x18] sm:$0xff] %v440_v20  ;;  %v209_v22 = vpop.f32.mrb[3].mxu0  ;;  %280 = vst [vmem:[#allocation7 + $0x58] sm:$0xff] %v648_v21  ;;  %v241_v23 = vpop.f32.mrb[3].mxu1  ;;  %v314_v30 = vmul.f32 %v440_v20, %v440_v20 }
 0x11f   :  { %270 = vst [vmem:[#allocation7 + $0x8] sm:$0xff] %v209_v22  ;;  %v290_v25 = vadd.f32 %v209_v22, %v206_v18  ;;  %v312_v26 = vmul.f32 %v209_v22, %v209_v22  ;;  %278 = vst [vmem:[#allocation7 + $0x48] sm:$0xff] %v241_v23 }
 0x121   :  { %v291_v28 = vadd.f32 %v439_v16, %v290_v25  ;;  %v327_v29 = vadd.f32 %v312_v26, %v311_v24 }
 0x123   :  { %v328_v31 = vadd.f32 %v327_v29, %v313_v27  ;;  %v443_v32 = vpop.f32.mrb[4].mxu0  ;;  %v292_v33 = vadd.f32 %v440_v20, %v291_v28  ;;  %v451_v34 = vpop.f32.mrb[4].mxu1 }
 0x124   :  { %275 = vst [vmem:[#allocation7 + $0x30] sm:$0xff] %v443_v32  ;;  %v222_v35 = vpop.f32.mrb[5].mxu0  ;;  %283 = vst [vmem:[#allocation7 + $0x70] sm:$0xff] %v451_v34  ;;  %v254_v36 = vpop.f32.mrb[5].mxu1 }
 0x125   :  { %273 = vst [vmem:[#allocation7 + $0x20] sm:$0xff] %v222_v35  ;;  %v293_v37 = vadd.f32 %v292_v33, %v222_v35  ;;  %v315_v38 = vmul.f32 %v222_v35, %v222_v35  ;;  %v329_v39 = vadd.f32 %v328_v31, %v314_v30  ;;  %v444_v40 = vpop.f32.mrb[6].mxu0  ;;  %281 = vst [vmem:[#allocation7 + $0x60] sm:$0xff] %v254_v36  ;;  %v452_v41 = vpop.f32.mrb[6].mxu1 }
 0x126   :  { %276 = vst [vmem:[#allocation7 + $0x38] sm:$0xff] %v444_v40  ;;  %v225_v42 = vpop.f32.mrb[7].mxu0  ;;  %284 = vst [vmem:[#allocation7 + $0x78] sm:$0xff] %v452_v41  ;;  %v257_v43 = vpop.f32.mrb[7].mxu1 }
 0x127   :  { %v330_v44 = vadd.f32 %v329_v39, %v315_v38  ;;  %274 = vst [vmem:[#allocation7 + $0x28] sm:$0xff] %v225_v42  ;;  %v294_v45 = vadd.f32 %v293_v37, %v225_v42  ;;  %v316_v46 = vmul.f32 %v225_v42, %v225_v42  ;;  %282 = vst [vmem:[#allocation7 + $0x68] sm:$0xff] %v257_v43 }
 0x128   :  { %549 = shalt.err (!%p546_p6)
}
 0x129   :  { %s550_s14 = scalar_lea.hbm %s686_s2, 2048 }
 0x12a   :  { %p551_p7 = scmp.ne.s32.totalorder %s686_s2, %s550_s14  ;;  %p554_p8 = scmp.lt.u32.totalorder %s550_s14, %s686_s2 }
 0x12c   :  { %p556_p9 = pnand %p554_p8, %p551_p7 }
 0x12e   :  { %559 = shalt.err (!%p556_p9)
}
 0x12f   :  { %s595_s19 = smov 128   ;;  %s596_s20 = smov 8   ;;  %v317_v47 = vmul.f32 %v443_v32, %v443_v32  ;;  %v295_v48 = vadd.f32 %v443_v32, %v294_v45  ;;  %v331_v49 = vadd.f32 %v330_v44, %v316_v46  ;;  %v318_v50 = vmul.f32 %v444_v40, %v444_v40 }
 0x130   :  { %368 = dma.vmem_to_hbm [thread:$0]  %s363_s10, 2048, %s686_s2, [#allocation4], %s595_s19, %s595_s19, %s596_s20   ;;  %v319_v53 = vmul.f32 %v645_v19, %v645_v19  ;;  %v320_v58 = vmul.f32 %v241_v23, %v241_v23  ;;  %v321_v59 = vmul.f32 %v642_v17, %v642_v17  ;;  %v322_v62 = vmul.f32 %v648_v21, %v648_v21 }
 0x131   :  { %v332_v51 = vadd.f32 %v331_v49, %v317_v47  ;;  %v296_v52 = vadd.f32 %v444_v40, %v295_v48  ;;  %v323_v1 = vmul.f32 %v254_v36, %v254_v36  ;;  %v324_v6 = vmul.f32 %v257_v43, %v257_v43  ;;  %s597_s2 = smov [#allocation8]  }
 0x132   :  { %v325_v7 = vmul.f32 %v451_v34, %v451_v34  ;;  %v326_v10 = vmul.f32 %v452_v41, %v452_v41  ;;  %s375_s23 = sshll.u32 %s597_s2, 4  ;;  %s376_s23 = int_to_ptr.vmem [resolvable:$true] %s375_s23 }
 0x133   :  { %v297_v54 = vadd.f32 %v296_v52, %v645_v19  ;;  %v333_v55 = vadd.f32 %v332_v51, %v318_v50  ;;  %s560_s24 = scalar_lea.vmem %s376_s23, 128  ;;  %p565_p11 = scmp.lt.s32.totalorder %s376_s23, %s376_s23 }
 0x134   :  { %p561_p10 = scmp.ne.s32.totalorder %s376_s23, %s560_s24  ;;  %p566_p12 = scmp.lt.s32.totalorder %s560_s24, %s560_s24 }
 0x135   :  { %v334_v56 = vadd.f32 %v333_v55, %v319_v53  ;;  %v298_v57 = vadd.f32 %v297_v54, %v241_v23 }
 0x136   :  { %p567_p13 = por %p566_p12, %p565_p11 }
 0x137   :  { %v299_v60 = vadd.f32 %v642_v17, %v298_v57  ;;  %v335_v61 = vadd.f32 %v334_v56, %v320_v58  ;;  %v348_v17 = vlaneseq }
 0x138   :  { %p568_p0 = pnand %p567_p13, %p561_p10 }
 0x139   :  { %v336_v63 = vadd.f32 %v335_v61, %v321_v59  ;;  %v300_v0 = vadd.f32 %v648_v21, %v299_v60  ;;  %v349_v22 = vshrl.u32 %v348_v17, 7 }
 0x13b   :  { %v301_v2 = vadd.f32 %v300_v0, %v254_v36  ;;  %v337_v3 = vadd.f32 %v336_v63, %v322_v62  ;;  %vm352_vm0 = vcmp.eq.s32.totalorder %v349_v22, 1  ;;  %vm351_vm1 = vcmp.eq.s32.totalorder %v349_v22, 0 }
 0x13d   :  { %v338_v4 = vadd.f32 %v337_v3, %v323_v1  ;;  %v302_v5 = vadd.f32 %v301_v2, %v257_v43 }
 0x13f   :  { %v303_v8 = vadd.f32 %v451_v34, %v302_v5  ;;  %v339_v9 = vadd.f32 %v338_v4, %v324_v6 }
 0x141   :  { %v304_v11 = vadd.f32 %v452_v41, %v303_v8  ;;  %v340_v12 = vadd.f32 %v339_v9, %v325_v7 }
 0x143   :  { %v305_v13 = vrot.slane %v304_v11, 4  ;;  %v341_v14 = vadd.f32 %v340_v12, %v326_v10 }
 0x145   :  { %v306_v15 = vadd.f32 %v305_v13, %v304_v11  ;;  %v342_v16 = vrot.slane %v341_v14, 4 }
 0x147   :  { %v307_v18 = vrot.slane %v306_v15, 2  ;;  %v343_v19 = vadd.f32 %v342_v16, %v341_v14 }
 0x149   :  { %v308_v20 = vadd.f32 %v307_v18, %v306_v15  ;;  %v344_v21 = vrot.slane %v343_v19, 2 }
 0x14b   :  { %v345_v23 = vadd.f32 %v344_v21, %v343_v19  ;;  %v309_v24 = vrot.slane %v308_v20, 1 }
 0x14d   :  { %v346_v25 = vrot.slane %v345_v23, 1  ;;  %v310_v27 = vadd.f32 %v309_v24, %v308_v20 }
 0x14f   :  { %v347_v26 = vadd.f32 %v346_v25, %v345_v23 }
 0x151   :  { %v353_v28 = vsel %vm352_vm0, %v347_v26, 0.0 }
 0x152   :  { %v354_v29 = vsel %vm351_vm1, %v310_v27, %v353_v28 }
 0x153   :  { %356 = vst [vmem:[#allocation8] sm:$0xff] %v354_v29 }
 0x154   :  { %571 = shalt.err (!%p568_p0)
}
 0x155   :  { %s572_s27 = scalar_lea.hbm %s687_s3, 128 }
 0x156   :  { %p573_p1 = scmp.ne.s32.totalorder %s687_s3, %s572_s27  ;;  %p576_p2 = scmp.lt.u32.totalorder %s572_s27, %s687_s3 }
 0x158   :  { %p578_p3 = pnand %p576_p2, %p573_p1 }
 0x15a   :  { %581 = shalt.err (!%p578_p3)
}
 0x15b   :  { %378 = dma.vmem_to_hbm [thread:$0]  %s376_s23, 128, %s687_s3, [#allocation9]  }
 0x15c   :  { %586 = dma.done.wait [#allocation4], 2048  }
 0x15d   :  { %587 = vsyncadd [#allocation4], 4294965248 }
 0x15e   :  { %588 = dma.done.wait [#allocation9], 128  }
 0x15f   :  { %589 = vsyncadd [#allocation9], 4294967168 }
 0x160   :  { %385 = vsyncpa [#allocation3], 1 }
 0x161   :  { %386 = vsyncpa [#allocation6], 1 }
 0x162   :  { %387 = vsyncpa [#allocation4], 1 }
 0x163   :  { %388 = vsyncpa [#allocation9], 1 }

</bundles_post_ra>
